<compile_context>
chip_gen: v5e
topology: v5e:2x2
jax: 0.10.0
libtpu: 0.0.40
codegen_flags: <defaults>
</compile_context>

<pallas_src>
import functools

import jax
import jax.numpy as jnp
from jax.experimental import pallas as pl
from jax.experimental.pallas import tpu as pltpu


def _round_up(x, m):
    return ((x + m - 1) // m) * m


def _center_loss_kernel(labels_ref, feat_ref, out_ref,
                        sums_ref, counts_ref, sq_ref, *, inv_nd):
    step = pl.program_id(0)

    @pl.when(step == 0)
    def _():
        sums_ref[...] = jnp.zeros_like(sums_ref)
        counts_ref[...] = jnp.zeros_like(counts_ref)
        sq_ref[0] = jnp.float32(0.0)

    labels = labels_ref[...]                     # (1, tile_n) int32
    feat = feat_ref[...]                         # (tile_n, d) native dtype
    n_class_pad = sums_ref.shape[0]
    tile_n = feat.shape[0]

    # One-hot assignment matrix (n_class_pad, tile_n). Padded rows have
    # label -1 and padded classes never appear, so they contribute nothing.
    class_ids = jax.lax.broadcasted_iota(jnp.int32, (n_class_pad, tile_n), 0)
    mask = class_ids == labels                   # broadcast over sublanes

    # scatter_add of ones -> per-class counts (accumulated across tiles)
    counts_ref[...] += jnp.sum(mask.astype(jnp.float32), axis=1, keepdims=True)

    # scatter_add of features -> per-class sums, on the MXU, f32 accumulation
    onehot = mask.astype(feat.dtype)             # bf16 path if feat is bf16
    sums_ref[...] += jnp.dot(onehot, feat, preferred_element_type=jnp.float32)

    # running sum of ||x_i||^2 in f32
    feat_f32 = feat.astype(jnp.float32)
    sq_ref[0] += jnp.sum(feat_f32 * feat_f32)

    @pl.when(step == pl.num_programs(0) - 1)
    def _():
        counts = jnp.maximum(counts_ref[...], jnp.float32(1.0))   # (C, 1)
        sums = sums_ref[...]                                      # (C, d)
        # S = sum_c ||sums_c||^2 / counts_c   (zero-count classes contribute 0)
        s_val = jnp.sum(jnp.sum(sums * sums, axis=1, keepdims=True) / counts)
        out_ref[0, 0] = (sq_ref[0] - s_val) * jnp.float32(inv_nd)


def center_loss(s_feature, s_labels, n_class, *, max_tile_n=512):
    """Pallas TPU equivalent of Center_loss(n_class).forward(s_feature, s_labels)."""
    n, d = s_feature.shape

    max_tile_n = _round_up(int(max_tile_n), 128)
    tile_n = min(max_tile_n, _round_up(n, 128))       # lane dim / MXU K dim
    n_pad = _round_up(n, tile_n)
    n_class_pad = _round_up(max(int(n_class), 1), 8)  # sublane-aligned classes

    feat = s_feature                                   # keep native dtype
    labels = s_labels.astype(jnp.int32)
    if n_pad != n:
        feat = jnp.pad(feat, ((0, n_pad - n), (0, 0)))
        labels = jnp.pad(labels, (0, n_pad - n), constant_values=-1)
    labels2d = labels.reshape(1, n_pad)

    kernel = functools.partial(_center_loss_kernel, inv_nd=1.0 / float(n * d))

    out = pl.pallas_call(
        kernel,
        out_shape=jax.ShapeDtypeStruct((1, 1), jnp.float32),
        grid_spec=pltpu.PrefetchScalarGridSpec(
            num_scalar_prefetch=0,
            grid=(n_pad // tile_n,),
            in_specs=[
                pl.BlockSpec((1, tile_n), lambda i: (0, i)),   # labels tile
                pl.BlockSpec((tile_n, d), lambda i: (i, 0)),   # feature tile
            ],
            out_specs=pl.BlockSpec(memory_space=pltpu.MemorySpace.SMEM),
            scratch_shapes=[
                pltpu.VMEM((n_class_pad, d), jnp.float32),     # per-class sums
                pltpu.VMEM((n_class_pad, 1), jnp.float32),     # per-class counts
                pltpu.SMEM((1,), jnp.float32),                 # sum ||x||^2
            ],
        ),
        compiler_params=pltpu.CompilerParams(
            dimension_semantics=("arbitrary",),                # reduction axis
        ),
    )(labels2d, feat)
    return out[0, 0]


def _reference(s_feature, s_labels, n_class):
    # Pure-JAX reference mirroring the PyTorch module.
    feat = s_feature.astype(jnp.float32)
    onehot = jax.nn.one_hot(s_labels, n_class, dtype=jnp.float32)   # (n, C)
    counts = jnp.maximum(onehot.sum(axis=0), 1.0)                   # (C,)
    sums = onehot.T @ feat                                          # (C, d)
    centroid = sums / counts[:, None]
    temp = centroid[s_labels]                                       # (n, d)
    return jnp.mean((temp - feat) ** 2)


if __name__ == "__main__":
    key = jax.random.PRNGKey(0)
    k1, k2, k3, k4 = jax.random.split(key, 4)

    # Test 1: module-sized toy shapes (single tile).
    n, d, n_class = 8, 32, 4
    x = jax.random.normal(k1, (n, d), dtype=jnp.float32)
    y = jax.random.randint(k2, (n,), 0, n_class, dtype=jnp.int32)
    loss = jax.block_until_ready(center_loss(x, y, n_class))
    ref = _reference(x, y, n_class)
    assert jnp.allclose(loss, ref, rtol=1e-4, atol=1e-6), (loss, ref)

    # Test 2: multi-tile grid + batch-padding path (grid = 2 steps).
    n2, d2, n_class2 = 200, 32, 7
    x2 = jax.random.normal(k3, (n2, d2), dtype=jnp.float32)
    y2 = jax.random.randint(k4, (n2,), 0, n_class2, dtype=jnp.int32)
    loss2 = jax.block_until_ready(center_loss(x2, y2, n_class2, max_tile_n=128))
    ref2 = _reference(x2, y2, n_class2)
    assert jnp.allclose(loss2, ref2, rtol=1e-4, atol=1e-6), (loss2, ref2)

    # Test 3: native bf16 features (bf16 MXU operands, f32 accumulation).
    x2_bf16 = x2.astype(jnp.bfloat16)
    loss3 = jax.block_until_ready(center_loss(x2_bf16, y2, n_class2, max_tile_n=128))
    ref3 = _reference(x2_bf16.astype(jnp.float32), y2, n_class2)
    assert jnp.allclose(loss3, ref3, rtol=1e-3, atol=1e-5), (loss3, ref3)

    print("KERNEL_OK")
</pallas_src>

<mosaic_0001>
module attributes {stable_mosaic.version = 11 : i64} {
  func.func @_center_loss_kernel(%arg0: i32, %arg1: memref<1x128xi32, #tpu.memory_space<vmem>>, %arg2: memref<128x32xf32, #tpu.memory_space<vmem>>, %arg3: memref<1x1xf32, #tpu.memory_space<smem>>, %arg4: memref<8x32xf32, #tpu.memory_space<vmem>>, %arg5: memref<8x1xf32, #tpu.memory_space<vmem>>, %arg6: memref<1xf32, #tpu.memory_space<smem>>) attributes {dimension_semantics = [#tpu.dimension_semantics<arbitrary>], iteration_bounds = array<i64: 1>, scalar_prefetch = 0 : i64, scratch_operands = 3 : i64, tpu.core_type = #tpu.core_type<tc>, window_params = [{transform_indices = @transform_0, window_bounds = array<i64: 1, 128>}, {transform_indices = @transform_1, window_bounds = array<i64: 128, 32>}, {transform_indices = @transform_2, window_bounds = array<i64: 1, 1>}]} {
    %c0_i32 = arith.constant 0 : i32
    %0 = arith.cmpi eq, %arg0, %c0_i32 : i32
    %1 = arith.extui %0 : i1 to i32
    %c0_i32_0 = arith.constant 0 : i32
    %2 = arith.cmpi ne, %1, %c0_i32_0 : i32
    scf.if %2 {
      %cst_18 = arith.constant 0.000000e+00 : f32
      %32 = vector.broadcast %cst_18 : f32 to vector<8x32xf32>
      %c0_19 = arith.constant 0 : index
      %c0_20 = arith.constant 0 : index
      %33 = vector.load %arg4[%c0_19, %c0_20] : memref<8x32xf32, #tpu.memory_space<vmem>>, vector<8x32xf32>
      tpu.vector_store %arg4[%c0_19, %c0_20], %32 {strides = array<i32>} : memref<8x32xf32, #tpu.memory_space<vmem>>, vector<8x32xf32>,
      %cst_21 = arith.constant 0.000000e+00 : f32
      %34 = vector.broadcast %cst_21 : f32 to vector<8x1xf32>
      %c0_22 = arith.constant 0 : index
      %c0_23 = arith.constant 0 : index
      %35 = vector.load %arg5[%c0_22, %c0_23] : memref<8x1xf32, #tpu.memory_space<vmem>>, vector<8x1xf32>
      tpu.vector_store %arg5[%c0_22, %c0_23], %34 {strides = array<i32>} : memref<8x1xf32, #tpu.memory_space<vmem>>, vector<8x1xf32>,
      %cst_24 = arith.constant 0.000000e+00 : f32
      %c0_25 = arith.constant 0 : index
      %36 = memref.load %arg6[%c0_25] : memref<1xf32, #tpu.memory_space<smem>>
      memref.store %cst_24, %arg6[%c0_25] : memref<1xf32, #tpu.memory_space<smem>>
    } else {
    }
    %c0 = arith.constant 0 : index
    %c0_1 = arith.constant 0 : index
    %3 = vector.load %arg1[%c0, %c0_1] : memref<1x128xi32, #tpu.memory_space<vmem>>, vector<1x128xi32>
    %c0_2 = arith.constant 0 : index
    %c0_3 = arith.constant 0 : index
    %4 = vector.load %arg2[%c0_2, %c0_3] : memref<128x32xf32, #tpu.memory_space<vmem>>, vector<128x32xf32>
    %5 = tpu.iota {dimensions = array<i32: 0>} : vector<8x128xi32>
    %6 = vector.broadcast %3 : vector<1x128xi32> to vector<8x128xi32>
    %7 = arith.cmpi eq, %5, %6 : vector<8x128xi32>
    %c0_4 = arith.constant 0 : index
    %c0_5 = arith.constant 0 : index
    %8 = vector.load %arg5[%c0_4, %c0_5] : memref<8x1xf32, #tpu.memory_space<vmem>>, vector<8x1xf32>
    %9 = arith.extui %7 : vector<8x128xi1> to vector<8x128xi32>
    %10 = arith.sitofp %9 : vector<8x128xi32> to vector<8x128xf32>
    %cst = arith.constant dense<0.000000e+00> : vector<8xf32>
    %11 = vector.multi_reduction <add>, %10, %cst [1] : vector<8x128xf32> to vector<8xf32>
    %12 = vector.shape_cast %11 : vector<8xf32> to vector<8x1xf32>
    %13 = arith.addf %8, %12 : vector<8x1xf32>
    %c0_6 = arith.constant 0 : index
    %c0_7 = arith.constant 0 : index
    %14 = vector.load %arg5[%c0_6, %c0_7] : memref<8x1xf32, #tpu.memory_space<vmem>>, vector<8x1xf32>
    tpu.vector_store %arg5[%c0_6, %c0_7], %13 {strides = array<i32>} : memref<8x1xf32, #tpu.memory_space<vmem>>, vector<8x1xf32>,
    %15 = arith.extui %7 : vector<8x128xi1> to vector<8x128xi32>
    %16 = arith.sitofp %15 : vector<8x128xi32> to vector<8x128xf32>
    %c0_8 = arith.constant 0 : index
    %c0_9 = arith.constant 0 : index
    %17 = vector.load %arg4[%c0_8, %c0_9] : memref<8x32xf32, #tpu.memory_space<vmem>>, vector<8x32xf32>
    %cst_10 = arith.constant dense<0.000000e+00> : vector<8x32xf32>
    %18 = tpu.matmul %16, %4, %cst_10 {dimension_numbers = #tpu.dot_dimension_numbers<[1], [0], [0], [1], [0, 0, 1, 1], [], []>} : vector<8x128xf32>, vector<128x32xf32>, vector<8x32xf32> -> vector<8x32xf32>
    %19 = arith.addf %17, %18 : vector<8x32xf32>
    %c0_11 = arith.constant 0 : index
    %c0_12 = arith.constant 0 : index
    %20 = vector.load %arg4[%c0_11, %c0_12] : memref<8x32xf32, #tpu.memory_space<vmem>>, vector<8x32xf32>
    tpu.vector_store %arg4[%c0_11, %c0_12], %19 {strides = array<i32>} : memref<8x32xf32, #tpu.memory_space<vmem>>, vector<8x32xf32>,
    %c0_13 = arith.constant 0 : index
    %21 = memref.load %arg6[%c0_13] : memref<1xf32, #tpu.memory_space<smem>>
    %22 = arith.mulf %4, %4 : vector<128x32xf32>
    %23 = vector.shape_cast %22 : vector<128x32xf32> to vector<1x128x32xf32>
    %cst_14 = arith.constant dense<0.000000e+00> : vector<1xf32>
    %24 = vector.multi_reduction <add>, %23, %cst_14 [1, 2] : vector<1x128x32xf32> to vector<1xf32>
    %25 = vector.shape_cast %24 : vector<1xf32> to vector<1x1x1xf32>
    %26 = vector.extract %25[0, 0, 0] : f32 from vector<1x1x1xf32>
    %27 = arith.addf %21, %26 : f32
    %c0_15 = arith.constant 0 : index
    %28 = memref.load %arg6[%c0_15] : memref<1xf32, #tpu.memory_space<smem>>
    memref.store %27, %arg6[%c0_15] : memref<1xf32, #tpu.memory_space<smem>>
    %c0_i32_16 = arith.constant 0 : i32
    %29 = arith.cmpi eq, %arg0, %c0_i32_16 : i32
    %30 = arith.extui %29 : i1 to i32
    %c0_i32_17 = arith.constant 0 : i32
    %31 = arith.cmpi ne, %30, %c0_i32_17 : i32
    scf.if %31 {
      %c0_18 = arith.constant 0 : index
      %c0_19 = arith.constant 0 : index
      %32 = vector.load %arg5[%c0_18, %c0_19] : memref<8x1xf32, #tpu.memory_space<vmem>>, vector<8x1xf32>
      %cst_20 = arith.constant 1.000000e+00 : f32
      %33 = vector.broadcast %cst_20 : f32 to vector<8x1xf32>
      %34 = arith.maximumf %32, %33 : vector<8x1xf32>
      %c0_21 = arith.constant 0 : index
      %c0_22 = arith.constant 0 : index
      %35 = vector.load %arg4[%c0_21, %c0_22] : memref<8x32xf32, #tpu.memory_space<vmem>>, vector<8x32xf32>
      %36 = arith.mulf %35, %35 : vector<8x32xf32>
      %cst_23 = arith.constant dense<0.000000e+00> : vector<8xf32>
      %37 = vector.multi_reduction <add>, %36, %cst_23 [1] : vector<8x32xf32> to vector<8xf32>
      %38 = vector.shape_cast %37 : vector<8xf32> to vector<8x1xf32>
      %39 = arith.divf %38, %34 : vector<8x1xf32>
      %40 = vector.shape_cast %39 : vector<8x1xf32> to vector<1x8x1xf32>
      %cst_24 = arith.constant dense<0.000000e+00> : vector<1xf32>
      %41 = vector.multi_reduction <add>, %40, %cst_24 [1, 2] : vector<1x8x1xf32> to vector<1xf32>
      %42 = vector.shape_cast %41 : vector<1xf32> to vector<1x1x1xf32>
      %43 = vector.extract %42[0, 0, 0] : f32 from vector<1x1x1xf32>
      %c0_25 = arith.constant 0 : index
      %44 = memref.load %arg6[%c0_25] : memref<1xf32, #tpu.memory_space<smem>>
      %45 = arith.subf %44, %43 : f32
      %cst_26 = arith.constant 3.906250e-03 : f32
      %46 = arith.mulf %45, %cst_26 : f32
      %c0_27 = arith.constant 0 : index
      %c0_28 = arith.constant 0 : index
      %47 = memref.load %arg3[%c0_27, %c0_28] : memref<1x1xf32, #tpu.memory_space<smem>>
      memref.store %46, %arg3[%c0_27, %c0_28] : memref<1x1xf32, #tpu.memory_space<smem>>
    } else {
    }
    return
  }
  func.func @transform_0(%arg0: i32) -> (i32, i32) {
    %c0_i32 = arith.constant 0 : i32
    %c0_i32_0 = arith.constant 0 : i32
    return %c0_i32, %arg0 : i32, i32
  }
  func.func @transform_1(%arg0: i32) -> (i32, i32) {
    %c0_i32 = arith.constant 0 : i32
    %c0_i32_0 = arith.constant 0 : i32
    return %arg0, %c0_i32 : i32, i32
  }
  func.func @transform_2(%arg0: i32) -> (i32, i32) {
    %c0_i32 = arith.constant 0 : i32
    %c0_i32_0 = arith.constant 0 : i32
    %c0_i32_1 = arith.constant 0 : i32
    return %c0_i32, %c0_i32_0 : i32, i32
  }
}

</mosaic_0001>

<bundles_post_ra>
// kernel: tpu_custom_call.1
= control target key start
LH: loop header
LB: loop body
LE: loop exit
PB: predicated region body
PF: predicated region fallthrough
CT: control target
= control target key end

     0   :  { %vm16_vm0 = vcmask 261120   ;;  %v39_v2 = vlaneseq  ;;  %v216_v3 = vmov 0.0   ;;  %s335_s0 = inlined_call_operand.vmem [shape: s32[1,128], index: 0, kind: input, shape index: {}]   ;;  %s336_s1 = inlined_call_operand.vmem [shape: f32[128,32], index: 1, kind: input, shape index: {}]   ;;  %s337_s2 = inlined_call_operand.hbm [shape: f32[1,1], index: 2, kind: output, shape index: {}]  }
   0x1   :  { %v237_v0 = vld [vmem:[%s336_s1 + $0x78] sm:$0xff]  ;;  %v242_v1 = vld [vmem:[%s336_s1 + $0x70] sm:$0xff]  ;;  %17 = vst.msk [vmem:[#allocation2] sm:$0xff] %vm16_vm0, %v216_v3  ;;  %v250_v4 = vld [vmem:[%s336_s1 + $0x68] sm:$0xff] }
   0x2   :  { %52 = vmatpush.msra.mxu0 %v237_v0  ;;  %v256_v5 = vld [vmem:[%s336_s1 + $0x60] sm:$0xff]  ;;  %v34_v6 = vld [vmem:[%s336_s1 + $0x58] sm:$0xff]  ;;  %v40_v8 = vshrl.u32 %v39_v2, 7  ;;  %v25_v9 = vld [vmem:[%s336_s1 + $0x10] sm:$0xff] }
   0x3   :  { %v26_v7 = vld [vmem:[%s336_s1 + $0x18] sm:$0xff]  ;;  %v24_v10 = vld [vmem:[%s336_s1 + $0x8] sm:$0xff]  ;;  %v78_v11 = vmul.f32 %v25_v9, %v25_v9  ;;  %v23_v12 = vld [vmem:[%s336_s1] sm:$0xff] }
   0x4   :  { %53 = vmatpush.msra.mxu0 %v242_v1  ;;  %v199_v13 = vld [vmem:[%s335_s0] ss:$0 sm:$0xff] }
   0x6   :  { %54 = vmatpush.msra.mxu0 %v250_v4 }
   0x7   :  { %7 = vsyncpa [#allocation6], 0  ;;  %v27_v14 = vld [vmem:[%s336_s1 + $0x20] sm:$0xff]  ;;  %v79_v15 = vmul.f32 %v26_v7, %v26_v7  ;;  %v77_v16 = vmul.f32 %v24_v10, %v24_v10  ;;  %v76_v17 = vmul.f32 %v23_v12, %v23_v12  ;;  %v33_v18 = vld [vmem:[%s336_s1 + $0x50] sm:$0xff]  ;;  %vm42_vm1 = vcmp.eq.s32.totalorder %v40_v8, %v199_v13  ;;  %s180_s16 = sshll.u32 %s337_s2, 4  ;;  %s218_s20 = smov [#allocation5]   ;;  %s181_s16 = int_to_ptr.hbm [resolvable:$true] %s180_s16 }
   0x8   :  { %55 = vmatpush.msra.mxu0 %v256_v5  ;;  %v80_v19 = vmul.f32 %v27_v14, %v27_v14  ;;  %v95_v20 = vsel %vm16_vm0, %v78_v11, 0.0  ;;  %v190_v23 = vsel %vm42_vm1, 1.0, %v216_v3  ;;  %v32_v24 = vld [vmem:[%s336_s1 + $0x48] sm:$0xff]  ;;  %v31_v29 = vld [vmem:[%s336_s1 + $0x40] sm:$0xff]  ;;  %v29_v30 = vld [vmem:[%s336_s1 + $0x30] sm:$0xff]  ;;  %v217_v41 = vmov 1.0  }
   0x9   :  { %v93_v21 = vsel %vm16_vm0, %v77_v16, 0.0  ;;  %v92_v22 = vsel %vm16_vm0, %v76_v17, 0.0  ;;  %v28_v25 = vld [vmem:[%s336_s1 + $0x28] sm:$0xff]  ;;  %46 = vadd.xlane.f32.xlu0 %v190_v23  ;;  %v97_v28 = vsel %vm16_vm0, %v79_v15, 0.0  ;;  %v82_v32 = vmul.f32 %v29_v30, %v29_v30  ;;  %v30_v34 = vld [vmem:[%s336_s1 + $0x38] sm:$0xff] }
   0xa   :  { %56 = vmatpush.msra.mxu0 %v34_v6  ;;  %v94_v26 = vadd.f32 %v93_v21, %v92_v22  ;;  %v81_v27 = vmul.f32 %v28_v25, %v28_v25  ;;  %v99_v33 = vsel %vm16_vm0, %v80_v19, 0.0  ;;  %v83_v42 = vmul.f32 %v30_v34, %v30_v34 }
   0xb   :  { %v103_v38 = vsel %vm16_vm0, %v82_v32, 0.0  ;;  %v84_v43 = vmul.f32 %v31_v29, %v31_v29  ;;  %v85_v44 = vmul.f32 %v32_v24, %v32_v24  ;;  %v86_v46 = vmul.f32 %v33_v18, %v33_v18 }
   0xc   :  { %57 = vmatpush.msra.mxu0 %v33_v18  ;;  %v96_v31 = vadd.f32 %v95_v20, %v94_v26  ;;  %v101_v36 = vsel %vm16_vm0, %v81_v27, 0.0  ;;  %v105_v45 = vsel %vm16_vm0, %v83_v42, 0.0  ;;  %vm18_vm2 = vcmask 7168  }
   0xd   :  { %v107_v47 = vsel %vm16_vm0, %v84_v43, 0.0  ;;  %v87_v49 = vmul.f32 %v34_v6, %v34_v6  ;;  %v109_v50 = vsel %vm16_vm0, %v85_v44, 0.0  ;;  %19 = vst.msk [vmem:[#allocation3] sm:$0xff] %vm18_vm2, %v216_v3  ;;  %v88_v52 = vmul.f32 %v256_v5, %v256_v5 }
   0xe   :  { %58 = vmatpush.msra.mxu0 %v32_v24  ;;  %v98_v35 = vadd.f32 %v97_v28, %v96_v31  ;;  %v111_v53 = vsel %vm16_vm0, %v86_v46, 0.0  ;;  %v89_v55 = vmul.f32 %v250_v4, %v250_v4  ;;  %v90_v59 = vmul.f32 %v242_v1, %v242_v1  ;;  %v51_v1 = vld [vmem:[#allocation2] sm:$0xff] }
   0xf   :  { %v113_v56 = vsel %vm16_vm0, %v87_v49, 0.0  ;;  %v115_v60 = vsel %vm16_vm0, %v88_v52, 0.0  ;;  %v91_v63 = vmul.f32 %v237_v0, %v237_v0 }
  0x10   :  { %59 = vmatpush.msra.mxu0 %v31_v29  ;;  %v100_v37 = vadd.f32 %v99_v33, %v98_v35  ;;  %v117_v2 = vsel %vm16_vm0, %v89_v55, 0.0  ;;  %v119_v4 = vsel %vm16_vm0, %v90_v59, 0.0 }
  0x12   :  { %60 = vmatpush.msra.mxu0 %v30_v34  ;;  %v102_v39 = vadd.f32 %v101_v36, %v100_v37 }
  0x14   :  { %61 = vmatpush.msra.mxu0 %v29_v30  ;;  %v104_v40 = vadd.f32 %v103_v38, %v102_v39  ;;  %v43_v61 = vld [vmem:[#allocation3] sm:$0xff] }
  0x16   :  { %62 = vmatpush.msra.mxu0 %v28_v25  ;;  %v106_v48 = vadd.f32 %v105_v45, %v104_v40 }
  0x18   :  { %63 = vmatpush.msra.mxu0 %v27_v14  ;;  %v108_v51 = vadd.f32 %v107_v47, %v106_v48 }
  0x1a   :  { %64 = vmatpush.msra.mxu0 %v26_v7  ;;  %v110_v54 = vadd.f32 %v109_v50, %v108_v51  ;;  %v121_v7 = vsel %vm16_vm0, %v91_v63, 0.0 }
  0x1c   :  { %65 = vmatpush.msra.mxu0 %v25_v9  ;;  %v112_v58 = vadd.f32 %v111_v53, %v110_v54 }
  0x1e   :  { %66 = vmatpush.msra.mxu0 %v24_v10  ;;  %v114_v62 = vadd.f32 %v113_v56, %v112_v58 }
  0x20   :  { %67 = vmatpush.msra.mxu0 %v23_v12  ;;  %v116_v5 = vadd.f32 %v115_v60, %v114_v62 }
  0x21   :  { %191 = vmatmul.msk.f32.vlgmr.msra.gmra.mxu0 %vm42_vm1, %v217_v41 }
  0x22   :  { %v118_v6 = vadd.f32 %v117_v2, %v116_v5 }
  0x24   :  { %v120_v8 = vadd.f32 %v119_v4, %v118_v6 }
  0x26   :  { %v122_v9 = vadd.f32 %v121_v7, %v120_v8 }
  0x28   :  { %123 = vadd.xlane.f32.xlu1 %v122_v9 }
  0x7c   :  { %v47_v57 = vpop.xlane.xlu0 %46 }
  0x7d   :  { %v48_v3 = vadd.f32 %v47_v57, %v43_v61 }
  0x7f   :  { %50 = vst.msk [vmem:[#allocation3] sm:$0xff] %vm18_vm2, %v48_v3 }
  0x86   :  { %v138_v14 = vld [vmem:[#allocation3] sm:$0xff] }
  0x87   :  { %v139_v15 = vmax.f32 %v138_v14, 1.0 }
  0x89   :  { %200 = vrcp.f32 %v139_v15  ;;  %vm150_vm3 = vweird.f32 %v139_v15  ;;  %v156_v24 = vand.u32 2147483648, %v139_v15  ;;  %v154_v26 = vand.u32 2147483647, %v139_v15 }
  0x8b   :  { %v157_v29 = vor.u32 1.1754944e-38, %v156_v24  ;;  %vm155_vm6 = vcmp.eq.f32.partialorder %v154_v26, 8.507059e+37 }
  0x8f   :  { %v201_v16 = vpop.eup %200 }
  0x90   :  { %v146_v17 = vmul.f32 %v201_v16, %v139_v15  ;;  %vm151_vm4 = vweird.f32 %v201_v16 }
  0x91   :  { %vm152_vm5 = vmor %vm150_vm3, %vm151_vm4 }
  0x92   :  { %v147_v18 = vsub.f32 1.0, %v146_v17 }
  0x94   :  { %v148_v21 = vmul.f32 %v201_v16, %v147_v18 }
  0x96   :  { %v149_v25 = vadd.f32 %v201_v16, %v148_v21 }
  0x98   :  { %v153_v30 = vsel %vm152_vm5, %v201_v16, %v149_v25 }
  0x99   :  { %v158_v32 = vsel %vm155_vm6, %v157_v29, %v153_v30 }
  0x9b   :  { %v124_v19 = vpop.xlane.xlu1 %123 }
  0x9c   :  { %v125_v20 = vrot.slane %v124_v19, 4 }
  0x9e   :  { %v69_v10 = vpop.f32.mrf.mxu0  ;;  %v126_v22 = vadd.f32 %v125_v20, %v124_v19 }
  0x9f   :  { %v72_v11 = vadd.f32 %v69_v10, %v51_v1 }
  0xa0   :  { %v127_v23 = vrot.slane %v126_v22, 2 }
  0xa1   :  { %74 = vst.msk [vmem:[#allocation2] sm:$0xff] %vm16_vm0, %v72_v11 }
  0xa2   :  { %v128_v27 = vadd.f32 %v127_v23, %v126_v22 }
  0xa4   :  { %v129_v28 = vrot.slane %v128_v27, 1 }
  0xa6   :  { %v130_v31 = vadd.f32 %v129_v28, %v128_v27 }
  0xa8   :  { %v140_v0 = vld [vmem:[#allocation2] sm:$0xff]  ;;  %192 = vpush %v130_v31 }
  0xa9   :  { %v141_v12 = vmul.f32 %v140_v0, %v140_v0 }
  0xab   :  { %v142_v13 = vsel %vm16_vm0, %v141_v12, 0.0 }
  0xac   :  { %143 = vadd.xlane.f32.xlu0 %v142_v13 }
  0xd9   :  { %s193_s1 = spop %192 }
 0x11f   :  { %v144_v33 = vpop.xlane.xlu0 %143 }
 0x120   :  { %v159_v34 = vmul.f32 %v158_v32, %v144_v33 }
 0x122   :  { %v160_v35 = vsel %vm18_vm2, %v159_v34, 0.0 }
 0x123   :  { %161 = vadd.xlane.f32.xlu1 %v160_v35 }
 0x196   :  { %v162_v36 = vpop.xlane.xlu1 %161 }
 0x197   :  { %v163_v37 = vrot.slane %v162_v36, 4 }
 0x199   :  { %v164_v38 = vadd.f32 %v163_v37, %v162_v36 }
 0x19b   :  { %v165_v39 = vrot.slane %v164_v38, 2 }
 0x19d   :  { %v166_v40 = vadd.f32 %v165_v39, %v164_v38 }
 0x19f   :  { %v167_v41 = vrot.slane %v166_v40, 1 }
 0x1a1   :  { %v168_v42 = vadd.f32 %v167_v41, %v166_v40 }
 0x1a3   :  { %194 = vpush %v168_v42 }
 0x1d4   :  { %s195_s17 = spop %194 }
 0x1d5   :  { %s171_s18 = ssub.f32 %s193_s1, %s195_s17 }
 0x1d7   :  { %s172_s19 = smul.f32 0.00390625, %s171_s18 }
 0x1d9   :  { %174 = sst [smem:[#allocation5]] %s172_s19 }
 0x1da   :  { %183 = dma.smem_to_hbm %s218_s20, 16, %s181_s16, [#allocation6]  }
 0x1db   :  { %214 = dma.done.wait [#allocation6], 16  }
 0x1dc   :  { %215 = vsyncadd [#allocation6], 4294967280 }
 0x1dd   :  { %188 = sfence }
 0x1de   :  { %189 = vsyncpa [#allocation6], 1 }

</bundles_post_ra>
